<compile_context>
chip_gen: v7x
topology: tpu7x:2x2x1
jax: 0.10.0
libtpu: 0.0.40
codegen_flags: <defaults>
</compile_context>

<pallas_src>
import jax
import jax.numpy as jnp
from jax.experimental import pallas as pl
from jax.experimental.pallas import tpu as pltpu


# --------------------------------------------------------------------------- #
# Kernel                                                                      #
# --------------------------------------------------------------------------- #
def _make_kernel(n_scalars, d_half, approx_silu):
    def kernel(x_ref, w1_ref, w2_ref, out_ref):
        # In-kernel cast of the activation tile (no wrapper HBM pre-pass).
        x = x_ref[...].astype(w1_ref.dtype)

        # linear_1: one block-structured MXU matmul producing two lane-aligned
        # halves (slices at multiples of 128 lanes -> no lane shuffles):
        #   A = h[:, :d_half] = [scalars | gate,gate,gate | 0-pad]
        #   B = h[:, d_half:] = [   0    | vec_x,vec_y,vec_z | 0-pad]
        h = jnp.dot(x, w1_ref[...], preferred_element_type=jnp.float32)
        a = h[:, :d_half]
        b = h[:, d_half:]

        # e3nn Gate without any concatenate:
        #   scalar cols : silu(scalar)
        #   vector cols : vec * silu(gate)          (gate already sits in A)
        # exp + reciprocal run on the EUP slot (idle here).
        sig = pl.reciprocal(1.0 + jnp.exp(-a), approx=approx_silu)
        silu_a = a * sig
        col = jax.lax.broadcasted_iota(jnp.int32, a.shape, 1)
        mlp = jnp.where(col < n_scalars, silu_a, b * silu_a)

        # linear_2: second fused block-diagonal matmul, written straight to the
        # exact (tn, d_out) tile (narrow store; HBM writeback 44 B/node).
        out = jnp.dot(mlp.astype(w2_ref.dtype), w2_ref[...],
                      preferred_element_type=jnp.float32)
        out_ref[...] = out.astype(out_ref.dtype)

    return kernel


# --------------------------------------------------------------------------- #
# Weight folding (done once per parameter set, outside the per-call path)     #
# --------------------------------------------------------------------------- #
def _build_fused_weights(raw_params, dims, d_half):
    """Fold the two block-diagonal o3.Linear layers into dense matrices.

    Input/output feature layouts are e3nn channel-major:
        [0e channels | (1o ch 0: x,y,z) | (1o ch 1: x,y,z) | ...]
    Hidden layout (cols of W1, two lane-aligned halves of width d_half):
        A half: [scalars | gate(x-slot) | gate(y-slot) | gate(z-slot) | 0-pad]
        B half: [  0     |    vec_x     |    vec_y     |    vec_z    | 0-pad]
    MLP layout (rows of W2): [silu(scalars) | vec_x | vec_y | vec_z | 0-pad]
    """
    mul_s_in, mul_v_in, n_scalars, n_gates, n_gated, n_out_s, n_out_v = dims
    w1_s, w1_v, w2_s, w2_v = (jnp.asarray(w, jnp.float32) for w in raw_params)

    d_in = mul_s_in + 3 * mul_v_in
    d_out = n_out_s + 3 * n_out_v

    # ----- half A: scalars + triplicated gate columns -------------------------
    a = jnp.zeros((d_in, d_half), jnp.float32)
    a = a.at[:mul_s_in, :n_scalars].set(w1_s[:, :n_scalars])
    gate_cols = w1_s[:, n_scalars:n_scalars + n_gates]          # (mul_s_in, n_gates)
    for c in range(3):
        a = a.at[:mul_s_in,
                 n_scalars + c * n_gated: n_scalars + (c + 1) * n_gated].set(gate_cols)

    # ----- half B: component-major 1o block ------------------------------------
    b = jnp.zeros((d_in, d_half), jnp.float32)
    for c in range(3):
        b = b.at[mul_s_in + c: mul_s_in + 3 * mul_v_in: 3,
                 n_scalars + c * n_gated: n_scalars + (c + 1) * n_gated].set(w1_v)

    w1_full = jnp.concatenate([a, b], axis=1)                    # (d_in, 2*d_half)

    # ----- W2: component-major MLP rows -> channel-major e3nn output -----------
    w2_full = jnp.zeros((d_half, d_out), jnp.float32)
    w2_full = w2_full.at[:n_scalars, :n_out_s].set(w2_s)
    for c in range(3):
        w2_full = w2_full.at[n_scalars + c * n_gated: n_scalars + (c + 1) * n_gated,
                             n_out_s + c: n_out_s + 3 * n_out_v: 3].set(w2_v)

    return w1_full, w2_full


# --------------------------------------------------------------------------- #
# Factory: builds fused weights once, returns a jitted forward                 #
# --------------------------------------------------------------------------- #
def make_nonlinear_dipole_readout(raw_params, dims, *,
                                  compute_dtype=jnp.bfloat16, max_tile=1024):
    mul_s_in, mul_v_in, n_scalars, n_gates, n_gated, n_out_s, n_out_v = dims
    assert n_gates == n_gated, "Gate needs one 0e gate per gated 1o channel"

    d_in = mul_s_in + 3 * mul_v_in
    d_mlp = n_scalars + 3 * n_gated
    d_half = ((d_mlp + 127) // 128) * 128                 # lane-aligned halves
    d_out = n_out_s + 3 * n_out_v

    w1_full, w2_full = _build_fused_weights(raw_params, dims, d_half)
    w1c = w1_full.astype(compute_dtype)
    w2c = w2_full.astype(compute_dtype)

    # approx reciprocal only on the bf16 MXU path; exact on the f32 check path.
    approx_silu = (jnp.dtype(compute_dtype) == jnp.dtype(jnp.bfloat16))
    kernel = _make_kernel(n_scalars, d_half, approx_silu)
    w_bytes = (w1c.size + w2c.size) * jnp.dtype(compute_dtype).itemsize

    @jax.jit
    def forward(x):
        n_nodes, din = x.shape
        assert din == d_in

        # >= 2 roughly balanced "parallel" grid steps (v7x has 2 TensorCores);
        # tile rows rounded to 8 (sublane granularity); ragged tail handled by
        # Pallas partial-block masking -- no physical pad.
        half = -(-n_nodes // 2)
        tn = max(8, min(max_tile, -(-half // 8) * 8))
        grid = (pl.cdiv(n_nodes, tn),)

        cost = pl.CostEstimate(
            flops=2 * n_nodes * (d_in * 2 * d_half + d_half * d_out),
            transcendentals=n_nodes * d_half,
            bytes_accessed=int(n_nodes * (d_in * x.dtype.itemsize + d_out * 4)
                               + w_bytes),
        )

        return pl.pallas_call(
            kernel,
            out_shape=jax.ShapeDtypeStruct((n_nodes, d_out), jnp.float32),
            grid_spec=pltpu.PrefetchScalarGridSpec(
                num_scalar_prefetch=0,
                grid=grid,
                in_specs=[
                    pl.BlockSpec((tn, d_in), lambda i: (i, 0)),
                    pl.BlockSpec((d_in, 2 * d_half), lambda i: (0, 0)),
                    pl.BlockSpec((d_half, d_out), lambda i: (0, 0)),
                ],
                out_specs=pl.BlockSpec((tn, d_out), lambda i: (i, 0)),
            ),
            compiler_params=pltpu.CompilerParams(
                dimension_semantics=("parallel",)),
            cost_estimate=cost,
        )(x, w1c, w2c)

    return forward


# --------------------------------------------------------------------------- #
# Pure-JAX reference (mirror of the PyTorch forward, e3nn channel-major)       #
# --------------------------------------------------------------------------- #
def reference(x, raw_params, dims):
    mul_s_in, mul_v_in, n_scalars, n_gates, n_gated, n_out_s, n_out_v = dims
    w1_s, w1_v, w2_s, w2_v = raw_params
    n = x.shape[0]
    xs = x[:, :mul_s_in]
    xv = x[:, mul_s_in:].reshape(n, mul_v_in, 3)

    sg = xs @ w1_s                                     # (n, n_scalars + n_gates)
    hv = jnp.einsum("nim,ij->njm", xv, w1_v)           # (n, n_gated, 3)
    act_s = jax.nn.silu(sg[:, :n_scalars])
    act_g = jax.nn.silu(sg[:, n_scalars:])
    gated = hv * act_g[:, :, None]

    out_s = act_s @ w2_s                               # (n, n_out_s)
    out_v = jnp.einsum("njm,ji->nim", gated, w2_v)     # (n, n_out_v, 3)
    return jnp.concatenate([out_s, out_v.reshape(n, 3 * n_out_v)], axis=-1)


# --------------------------------------------------------------------------- #
# Demo / self-check                                                            #
# --------------------------------------------------------------------------- #
if __name__ == "__main__":
    # irreps_in = "64x0e + 64x1o", MLP_irreps = "16x0e + 16x1o",
    # n_energies = 2, compute_nacs = False  ->  irreps_out = "2x0e + 3x1o"
    mul_s_in, mul_v_in = 64, 64
    n_scalars = n_gates = n_gated = 16
    n_energies = 2
    n_out_s = n_energies
    n_out_v = n_energies + n_energies * (n_energies - 1) // 2   # = 3
    dims = (mul_s_in, mul_v_in, n_scalars, n_gates, n_gated, n_out_s, n_out_v)

    n_nodes = 256
    d_in = mul_s_in + 3 * mul_v_in

    key = jax.random.PRNGKey(0)
    kx, k1, k2, k3, k4 = jax.random.split(key, 5)
    x = jax.random.normal(kx, (n_nodes, d_in), dtype=jnp.float32)
    w1_s = jax.random.normal(k1, (mul_s_in, n_scalars + n_gates), jnp.float32) / jnp.sqrt(mul_s_in)
    w1_v = jax.random.normal(k2, (mul_v_in, n_gated), jnp.float32) / jnp.sqrt(mul_v_in)
    w2_s = jax.random.normal(k3, (n_scalars, n_out_s), jnp.float32) / jnp.sqrt(n_scalars)
    w2_v = jax.random.normal(k4, (n_gated, n_out_v), jnp.float32) / jnp.sqrt(n_gated)
    raw_params = (w1_s, w1_v, w2_s, w2_v)

    ref = jax.block_until_ready(reference(x, raw_params, dims))

    # f32 path (exact silu): tight check of the fused-weight construction.
    fwd_f32 = make_nonlinear_dipole_readout(raw_params, dims, compute_dtype=jnp.float32)
    out_f32 = jax.block_until_ready(fwd_f32(x))
    assert out_f32.shape == ref.shape == (n_nodes, n_out_s + 3 * n_out_v)
    assert jnp.allclose(out_f32, ref, rtol=1e-3, atol=1e-3)

    # bf16 MXU path (default): f32 accumulation + approx-reciprocal silu.
    fwd_bf16 = make_nonlinear_dipole_readout(raw_params, dims)
    out_bf16 = jax.block_until_ready(fwd_bf16(x))
    assert jnp.allclose(out_bf16, ref, rtol=5e-2, atol=5e-2)

    # Ragged node count: exercises the partial last grid block (no pad/slice).
    n_odd = n_nodes - 37
    out_odd = jax.block_until_ready(fwd_f32(x[:n_odd]))
    assert out_odd.shape == (n_odd, n_out_s + 3 * n_out_v)
    assert jnp.allclose(out_odd, ref[:n_odd], rtol=1e-3, atol=1e-3)

    print("KERNEL_OK")
</pallas_src>

<mosaic_0001>
module attributes {stable_mosaic.version = 11 : i64} {
  func.func @kernel(%arg0: i32, %arg1: memref<128x256xf32, #tpu.memory_space<vmem>>, %arg2: memref<256x256xf32, #tpu.memory_space<vmem>>, %arg3: memref<128x11xf32, #tpu.memory_space<vmem>>, %arg4: memref<128x11xf32, #tpu.memory_space<vmem>>) attributes {dimension_semantics = [#tpu.dimension_semantics<parallel>], iteration_bounds = array<i64: 2>, scalar_prefetch = 0 : i64, scratch_operands = 0 : i64, tpu.core_type = #tpu.core_type<tc>, window_params = [{transform_indices = @transform_0, window_bounds = array<i64: 128, 256>}, {pipeline_mode = #tpu.pipeline_mode<synchronous>, transform_indices = @transform_1, window_bounds = array<i64: 256, 256>}, {pipeline_mode = #tpu.pipeline_mode<synchronous>, transform_indices = @transform_2, window_bounds = array<i64: 128, 11>}, {transform_indices = @transform_3, window_bounds = array<i64: 128, 11>}]} {
    %c0 = arith.constant 0 : index
    %c0_0 = arith.constant 0 : index
    %0 = vector.load %arg1[%c0, %c0_0] : memref<128x256xf32, #tpu.memory_space<vmem>>, vector<128x256xf32>
    %c0_1 = arith.constant 0 : index
    %c0_2 = arith.constant 0 : index
    %1 = vector.load %arg2[%c0_1, %c0_2] : memref<256x256xf32, #tpu.memory_space<vmem>>, vector<256x256xf32>
    %cst = arith.constant dense<0.000000e+00> : vector<128x256xf32>
    %2 = tpu.matmul %0, %1, %cst {dimension_numbers = #tpu.dot_dimension_numbers<[1], [0], [0], [1], [0, 0, 1, 1], [], []>} : vector<128x256xf32>, vector<256x256xf32>, vector<128x256xf32> -> vector<128x256xf32>
    %3 = vector.extract_strided_slice %2 {offsets = [0, 0], sizes = [128, 128], strides = [1, 1]} : vector<128x256xf32> to vector<128x128xf32>
    %4 = vector.extract_strided_slice %2 {offsets = [0, 128], sizes = [128, 128], strides = [1, 1]} : vector<128x256xf32> to vector<128x128xf32>
    %cst_3 = arith.constant 0.000000e+00 : f32
    %5 = vector.broadcast %cst_3 : f32 to vector<128x128xf32>
    %6 = arith.subf %5, %3 : vector<128x128xf32>
    %7 = math.exp %6 : vector<128x128xf32>
    %cst_4 = arith.constant 1.000000e+00 : f32
    %8 = vector.broadcast %cst_4 : f32 to vector<128x128xf32>
    %9 = arith.addf %8, %7 : vector<128x128xf32>
    %10 = tpu.reciprocal %9 : vector<128x128xf32> -> vector<128x128xf32>
    %11 = arith.mulf %3, %10 : vector<128x128xf32>
    %12 = tpu.iota {dimensions = array<i32: 1>} : vector<128x128xi32>
    %c16_i32 = arith.constant 16 : i32
    %13 = vector.broadcast %c16_i32 : i32 to vector<128x128xi32>
    %14 = arith.cmpi slt, %12, %13 : vector<128x128xi32>
    %15 = arith.mulf %4, %11 : vector<128x128xf32>
    %16 = arith.select %14, %11, %15 : vector<128x128xi1>, vector<128x128xf32>
    %c0_5 = arith.constant 0 : index
    %c0_6 = arith.constant 0 : index
    %17 = vector.load %arg3[%c0_5, %c0_6] : memref<128x11xf32, #tpu.memory_space<vmem>>, vector<128x11xf32>
    %cst_7 = arith.constant dense<0.000000e+00> : vector<128x11xf32>
    %18 = tpu.matmul %16, %17, %cst_7 {dimension_numbers = #tpu.dot_dimension_numbers<[1], [0], [0], [1], [0, 0, 1, 1], [], []>} : vector<128x128xf32>, vector<128x11xf32>, vector<128x11xf32> -> vector<128x11xf32>
    %c0_8 = arith.constant 0 : index
    %c0_9 = arith.constant 0 : index
    %19 = vector.load %arg4[%c0_8, %c0_9] : memref<128x11xf32, #tpu.memory_space<vmem>>, vector<128x11xf32>
    tpu.vector_store %arg4[%c0_8, %c0_9], %18 {strides = array<i32>} : memref<128x11xf32, #tpu.memory_space<vmem>>, vector<128x11xf32>,
    return
  }
  func.func @transform_0(%arg0: i32) -> (i32, i32) {
    %c0_i32 = arith.constant 0 : i32
    %c0_i32_0 = arith.constant 0 : i32
    return %arg0, %c0_i32 : i32, i32
  }
  func.func @transform_1(%arg0: i32) -> (i32, i32) {
    %c0_i32 = arith.constant 0 : i32
    %c0_i32_0 = arith.constant 0 : i32
    %c0_i32_1 = arith.constant 0 : i32
    return %c0_i32, %c0_i32_0 : i32, i32
  }
  func.func @transform_2(%arg0: i32) -> (i32, i32) {
    %c0_i32 = arith.constant 0 : i32
    %c0_i32_0 = arith.constant 0 : i32
    %c0_i32_1 = arith.constant 0 : i32
    return %c0_i32, %c0_i32_0 : i32, i32
  }
  func.func @transform_3(%arg0: i32) -> (i32, i32) {
    %c0_i32 = arith.constant 0 : i32
    %c0_i32_0 = arith.constant 0 : i32
    return %arg0, %c0_i32 : i32, i32
  }
}

</mosaic_0001>

<bundles_post_ra>
// kernel: forward.1
= control target key start
LH: loop header
LB: loop body
LE: loop exit
PB: predicated region body
PF: predicated region fallthrough
CT: control target
= control target key end

     0   :  { %8 = vsyncpa [#allocation3], 0  ;;  %s1731_s0 = inlined_call_operand.hbm [shape: f32[256,256], index: 0, kind: input, shape index: {}]   ;;  %s1732_s1 = inlined_call_operand.hbm [shape: f32[256,256], index: 1, kind: input, shape index: {}]   ;;  %s1733_s2 = inlined_call_operand.hbm [shape: f32[128,11], index: 2, kind: input, shape index: {}]   ;;  %s1734_s3 = inlined_call_operand.vmem [shape: f32[256,11], index: 3, kind: output, shape index: {}]  }
   0x1   :  { %10 = vsyncpa [#allocation3 + $0x1], 0 }
   0x2   :  { %11 = vsyncpa [#allocation5], 0  ;;  %s1360_s12 = smov 0   ;;  %s1362_s13 = smov 0  }
   0x3   :  { %s1364_s14 = smov 0   ;;  %s1366_s15 = smov 0  }
   0x4 LB: > { %s875_s16 = sadd.s32 4294967295, %s1331_s15   ;;  %p37_p0 = scmp.ne.s32.totalorder %s1323_s13, %s1319_s12  ;;  %s1331_s15 = sphi %s1366_s15, %s1750_s15   ;;  %s1327_s14 = sphi %s1364_s14, %s1749_s14   ;;  %s1323_s13 = sphi %s1362_s13, %s1748_s13   ;;  %s1319_s12 = sphi %s1360_s12, %s1747_s12  }
   0x5   : > { %p1382_p1 = scmp.eq.s32.totalorder %s875_s16, 0  ;;  %p877_p2 = scmp.ge.s32.totalorder %s1331_s15, 1 }
   0x6   : > { %p116_p3 = scmp.lt.s32.totalorder %s1331_s15, 3  ;;  %s1333_s20 = smov [#allocation4]  }
   0x7   : > { %s1739_s17 = scalar_select %p1382_p1, 1, 0 }
   0x8   : > { %p1390_p4 = por %p1382_p1, %p37_p0  ;;  %p1394_p5 = pnand %p877_p2, %p116_p3 }
   0x9   : > { %s128_s21 = sshll.u32 %s1333_s20, 4  ;;  %s1334_s23 = smov [#allocation6]   ;;  %s129_s21 = int_to_ptr.vmem [resolvable:$true] %s128_s21 }
   0xa   : > { %s1740_s18 = scalar_select %p1390_p4, 1, 0 }
   0xb   : > { %s1741_s19 = scalar_select %p1394_p5, 1, 0 }
   0xc   : > { %p1089_p6 = pneg %p1394_p5  ;;  %s141_s24 = sshll.u32 %s1334_s23, 4  ;;  %s1406_s24 = int_to_ptr.vmem [resolvable:$true] %s141_s24 }
   0xd   : > { %s1207_s27 = scalar_lea.hbm %s1732_s1, 8192 }
   0xe   : > { %p1402_p7 = pnand %p1089_p6, %p1382_p1  ;;  %p1208_p8 = scmp.ne.s32.totalorder %s1732_s1, %s1207_s27 }
   0xf   : > { %p1214_p12 = scmp.lt.u32.totalorder %s1207_s27, %s1732_s1 }
  0x10   : > { %p1209_p9 = pneg %p1402_p7 }
  0x12   : > { %p1210_p10 = pnand %p1209_p9, %p1208_p8 }
  0x14   : > { %p1211_p11 = pneg %p1210_p10 }
  0x16   : > { %p1216_p13 = pnand %p1214_p12, %p1211_p11 }
  0x18   : > { %1219 = shalt.err (!%p1216_p13)
}
  0x19   : > { %s1220_s5 = scalar_lea.vmem %s129_s21, 8192  ;;  %p1228_p6 = scmp.lt.s32.totalorder %s129_s21, %s129_s21 }
  0x1a   : > { %p1221_p0 = scmp.ne.s32.totalorder %s129_s21, %s1220_s5  ;;  %p1229_p1 = scmp.lt.s32.totalorder %s1220_s5, %s1220_s5 }
  0x1c   : > { %p1223_p2 = pnand %p1221_p0, %p1209_p9  ;;  %p1230_p4 = por %p1229_p1, %p1228_p6 }
  0x1e   : > { %p1224_p3 = pneg %p1223_p2 }
  0x20   : > { %p1231_p5 = pnand %p1230_p4, %p1224_p3 }
  0x22   : > { %1234 = shalt.err (!%p1231_p5)
}
  0x23   : > { %s1335_s6 = smov 256   ;;  %s1336_s7 = smov 16  }
  0x24   : > { %1092 = dma.hbm_to_vmem [thread:$0]  (!%p1402_p7), %s1732_s1, 8192, %s129_s21, [#allocation5], %s1335_s6, %s1335_s6, %s1336_s7  }
  0x25   : > { %s1235_s12 = scalar_lea.hbm %s1733_s2, 2048 }
  0x26   : > { %p1236_p1 = scmp.ne.s32.totalorder %s1733_s2, %s1235_s12  ;;  %p1242_p8 = scmp.lt.u32.totalorder %s1235_s12, %s1733_s2 }
  0x28   : > { %p1238_p4 = pnand %p1236_p1, %p1209_p9 }
  0x2a   : > { %p1239_p5 = pneg %p1238_p4 }
  0x2c   : > { %p1244_p10 = pnand %p1242_p8, %p1239_p5 }
  0x2e   : > { %1247 = shalt.err (!%p1244_p10)
}
  0x2f   : > { %s1248_s21 = scalar_lea.vmem %s1406_s24, 2048  ;;  %p1256_p0 = scmp.lt.s32.totalorder %s1406_s24, %s1406_s24 }
  0x30   : > { %p1249_p11 = scmp.ne.s32.totalorder %s1406_s24, %s1248_s21  ;;  %p1257_p2 = scmp.lt.s32.totalorder %s1248_s21, %s1248_s21 }
  0x32   : > { %p1251_p12 = pnand %p1249_p11, %p1209_p9  ;;  %p1258_p3 = por %p1257_p2, %p1256_p0 }
  0x34   : > { %p1252_p13 = pneg %p1251_p12 }
  0x36   : > { %p1259_p6 = pnand %p1258_p3, %p1252_p13 }
  0x38   : > { %1262 = shalt.err (!%p1259_p6)
}
  0x39   : > { %s1337_s27 = smov 128   ;;  %s1338_s28 = smov 8  }
  0x3a   : > { %1095 = dma.hbm_to_vmem [thread:$0]  (!%p1402_p7), %s1733_s2, 2048, %s1406_s24, [#allocation5], %s1337_s27, %s1337_s27, %s1338_s28  }
  0x3b   : > { %s1459_s4 = sadd.s32 1, %s1331_s15   ;;  %s24_s8 = sadd.s32 1, %s1327_s14 }
  0x3c   : > { %s21_s5 = ssub.s32 %s1331_s15, %s1459_s4  ;;  %p31_p1 = scmp.ne.s32.totalorder %s1327_s14, %s1323_s13 }
  0x3d   : > { %p22_p9 = scmp.eq.s32.totalorder %s21_s5, 0  ;;  %p32_p4 = scmp.eq.s32.totalorder %s1331_s15, 0 }
  0x3e   : > { %p1102_p8 = scmp.lt.s32.totalorder %s1331_s15, 2  ;;  %s155_s10 = sand.u32 1, %s1327_s14  }
  0x3f   : > { %s1468_s9 = scalar_select %p22_p9, %s1327_s14, %s24_s8  }
  0x40   : > { %p33_p5 = por %p32_p4, %p31_p1  ;;  %s894_s11 = sshll.u32 %s1331_s15, 12 }
  0x41   : > { %s881_s12 = sshll.u32 %s155_s10, 8  ;;  %s1476_s23 = scalar_lea.hbm %s1731_s0, %s894_s11 }
  0x42   : > { %s159_s24 = scalar_lea.vmem [#allocation2], %s881_s12  ;;  %p1478_p7 = pnand %p1102_p8, %p33_p5 }
  0x43   : > { %s167_s25 = sshll.u32 %s159_s24, 4  ;;  %s1484_s21 = scalar_lea.sflag [#allocation3], %s155_s10  ;;  %s1482_s25 = int_to_ptr.vmem [resolvable:$true] %s167_s25 }
  0x44   : > { %s1263_s27 = scalar_lea.hbm %s1476_s23, 4096  ;;  %p1265_p11 = pneg %p1478_p7 }
  0x45   : > { %p1264_p10 = scmp.ne.s32.totalorder %s1476_s23, %s1263_s27  ;;  %s1268_s30 = scalar_lea.hbm %s1731_s0, 8192 }
  0x46   : > { %p1269_p0 = scmp.lt.u32.totalorder %s1476_s23, %s1731_s0  ;;  %p1270_p2 = scmp.lt.u32.totalorder %s1268_s30, %s1263_s27 }
  0x47   : > { %p1266_p12 = pnand %p1265_p11, %p1264_p10  ;;  %p1272_p6 = scmp.lt.u32.totalorder %s1263_s27, %s1476_s23 }
  0x48   : > { %p1271_p3 = por %p1270_p2, %p1269_p0 }
  0x49   : > { %p1267_p13 = pneg %p1266_p12 }
  0x4a   : > { %p1273_p9 = por %p1272_p6, %p1271_p3 }
  0x4c   : > { %p1274_p1 = pnand %p1273_p9, %p1267_p13 }
  0x4e   : > { %1277 = shalt.err (!%p1274_p1)
}
  0x4f   : > { %s1278_s10 = scalar_lea.vmem %s1482_s25, 4096  ;;  %s1339_s11 = smov [#allocation2]  }
  0x50   : > { %p1279_p4 = scmp.ne.s32.totalorder %s1482_s25, %s1278_s10  ;;  %s1283_s12 = sshll.u32 %s1339_s11, 4  ;;  %s1284_s12 = int_to_ptr.vmem [resolvable:$false] %s1283_s12 }
  0x51   : > { %s1285_s22 = scalar_lea.vmem %s1284_s12, 8192  ;;  %p1286_p10 = scmp.lt.s32.totalorder %s1482_s25, %s1284_s12 }
  0x52   : > { %p1281_p5 = pnand %p1279_p4, %p1265_p11  ;;  %p1287_p12 = scmp.lt.s32.totalorder %s1285_s22, %s1278_s10 }
  0x54   : > { %p1282_p8 = pneg %p1281_p5  ;;  %p1288_p0 = por %p1287_p12, %p1286_p10 }
  0x56   : > { %p1289_p2 = pnand %p1288_p0, %p1282_p8 }
  0x58   : > { %1292 = shalt.err (!%p1289_p2)
}
  0x59   : > { %1099 = dma.hbm_to_vmem [thread:$0]  (!%p1478_p7), %s1476_s23, 4096, %s1482_s25, %s1484_s21, %s1335_s6, %s1335_s6, %s1336_s7  }
  0x5a   : > { %p1744_p11 = scmp.ne.s32.totalorder %s1741_s19, 0 }
  0x5b   : > { %s181_s20 = sand.u32 (!%p1744_p11), 1, %s1323_s13   ;;  %p1745_p13 = scmp.ne.s32.totalorder (!%p1744_p11), %s1740_s18, 0 }
  0x5c   : > { %179 = sbr.rel (%p1744_p11) target bundleno = 689 (0x2b1), region = 32  ;;  %s886_s24 = sshll.u32 (!%p1744_p11), %s181_s20, 8 }
  0x5d   : > { %s182_s27 = scalar_lea.sflag (!%p1744_p11), [#allocation3], %s181_s20  ;;  %s1518_s28 = scalar_lea.vmem (!%p1744_p11), [#allocation2], %s886_s24 }
  0x63   : > { %1310 = dma.done.wait (%p1745_p13), %s182_s27, 4096  }
  0x64   : > { %1312 = vsyncadd (%p1745_p13), %s182_s27, 4294963200  ;;  %p1746_p3 = scmp.ne.s32.totalorder %s1739_s17, 0 }
  0x66   : > { %1314 = dma.done.wait (%p1746_p3), [#allocation5], 10240  }
  0x67   : > { %1316 = vsyncadd (%p1746_p3), [#allocation5], 4294957056  ;;  %v256_v0 = vld [vmem:[#allocation4 + $0x8] sm:$0xff]  ;;  %v258_v1 = vld [vmem:[#allocation4 + $0x18] sm:$0xff]  ;;  %s889_s17 = sshll.u32 %s875_s16, 4  ;;  %vm772_vm1 = vcmask 89088  }
  0x68   : > { %v255_v2 = vld [vmem:[#allocation4] sm:$0xff]  ;;  %v983_v3 = vpack.c.bf16 %v258_v1, %v256_v0  ;;  %v257_v4 = vld [vmem:[#allocation4 + $0x10] sm:$0xff]  ;;  %v260_v5 = vld [vmem:[#allocation4 + $0x28] sm:$0xff]  ;;  %p218_p7 = scmp.lt.s32.totalorder %s889_s17, 31 }
  0x69   : > { %v262_v6 = vld [vmem:[#allocation4 + $0x38] sm:$0xff]  ;;  %v985_v7 = vpack.c.bf16 %v257_v4, %v255_v2  ;;  %v259_v9 = vld [vmem:[#allocation4 + $0x20] sm:$0xff]  ;;  %v261_v10 = vld [vmem:[#allocation4 + $0x30] sm:$0xff] }
  0x6a   : > { %v987_v8 = vpack.c.bf16 %v262_v6, %v260_v5  ;;  %v264_v11 = vld [vmem:[#allocation4 + $0x48] sm:$0xff]  ;;  %984 = vmatprep.subr.bf16.mxu0 %v983_v3  ;;  %v266_v12 = vld [vmem:[#allocation4 + $0x58] sm:$0xff]  ;;  %v989_v13 = vpack.c.bf16 %v261_v10, %v259_v9  ;;  %v263_v15 = vld [vmem:[#allocation4 + $0x40] sm:$0xff]  ;;  %s1752_s17 = smov (!%p218_p7, %s889_s17), 31 }
  0x6b   : > { %986 = vmatpush1.bf16.msra.mxu0 %v985_v7  ;;  %v991_v14 = vpack.c.bf16 %v266_v12, %v264_v11  ;;  %v265_v16 = vld [vmem:[#allocation4 + $0x50] sm:$0xff]  ;;  %v268_v17 = vld [vmem:[#allocation4 + $0x68] sm:$0xff]  ;;  %v270_v18 = vld [vmem:[#allocation4 + $0x78] sm:$0xff]  ;;  %s890_s18 = sshll.u32 %s1752_s17, 3 }
  0x6c   : > { %988 = vmatprep.subr.bf16.mxu0 %v987_v8  ;;  %v993_v19 = vpack.c.bf16 %v265_v16, %v263_v15  ;;  %v995_v20 = vpack.c.bf16 %v270_v18, %v268_v17  ;;  %v267_v21 = vld [vmem:[#allocation4 + $0x60] sm:$0xff]  ;;  %v269_v22 = vld [vmem:[#allocation4 + $0x70] sm:$0xff]  ;;  %v272_v23 = vld [vmem:[#allocation4 + $0x88] sm:$0xff]  ;;  %s1684_s7 = scalar_lea.vmem %s1734_s3, %s890_s18 }
  0x6d   : > { %v274_v24 = vld [vmem:[#allocation4 + $0x98] sm:$0xff]  ;;  %v997_v25 = vpack.c.bf16 %v269_v22, %v267_v21  ;;  %v271_v27 = vld [vmem:[#allocation4 + $0x80] sm:$0xff]  ;;  %v273_v28 = vld [vmem:[#allocation4 + $0x90] sm:$0xff] }
  0x6e   : > { %v999_v26 = vpack.c.bf16 %v274_v24, %v272_v23  ;;  %v276_v29 = vld [vmem:[#allocation4 + $0xa8] sm:$0xff]  ;;  %v278_v30 = vld [vmem:[#allocation4 + $0xb8] sm:$0xff]  ;;  %v1001_v31 = vpack.c.bf16 %v273_v28, %v271_v27  ;;  %v275_v33 = vld [vmem:[#allocation4 + $0xa0] sm:$0xff] }
  0x6f   : > { %990 = vmatpush1.bf16.msra.mxu0 %v989_v13  ;;  %v1003_v32 = vpack.c.bf16 %v278_v30, %v276_v29  ;;  %v277_v34 = vld [vmem:[#allocation4 + $0xb0] sm:$0xff]  ;;  %v280_v35 = vld [vmem:[#allocation4 + $0xc8] sm:$0xff]  ;;  %v282_v36 = vld [vmem:[#allocation4 + $0xd8] sm:$0xff] }
  0x70   : > { %992 = vmatprep.subr.bf16.mxu0 %v991_v14  ;;  %v1005_v37 = vpack.c.bf16 %v277_v34, %v275_v33  ;;  %v1007_v38 = vpack.c.bf16 %v282_v36, %v280_v35  ;;  %v279_v39 = vld [vmem:[#allocation4 + $0xc0] sm:$0xff]  ;;  %v281_v40 = vld [vmem:[#allocation4 + $0xd0] sm:$0xff]  ;;  %v224_v41 = vld [vmem:[%s1518_s28 + $0x8] sm:$0xff] }
  0x71   : > { %v284_v42 = vld [vmem:[#allocation4 + $0xe8] sm:$0xff]  ;;  %v286_v43 = vld [vmem:[#allocation4 + $0xf8] sm:$0xff]  ;;  %383 = vmatprep.mubr.f32.mxu0 %v224_v41  ;;  %v1009_v44 = vpack.c.bf16 %v281_v40, %v279_v39  ;;  %v283_v46 = vld [vmem:[#allocation4 + $0xe0] sm:$0xff] }
  0x72   : > { %v1011_v45 = vpack.c.bf16 %v286_v43, %v284_v42  ;;  %v285_v47 = vld [vmem:[#allocation4 + $0xf0] sm:$0xff]  ;;  %v288_v48 = vld [vmem:[#allocation4 + $0x108] sm:$0xff]  ;;  %v290_v49 = vld [vmem:[#allocation4 + $0x118] sm:$0xff] }
  0x73   : > { %994 = vmatpush1.bf16.msra.mxu0 %v993_v19  ;;  %v1013_v50 = vpack.c.bf16 %v285_v47, %v283_v46  ;;  %v1015_v51 = vpack.c.bf16 %v290_v49, %v288_v48  ;;  %v287_v52 = vld [vmem:[#allocation4 + $0x100] sm:$0xff]  ;;  %v289_v53 = vld [vmem:[#allocation4 + $0x110] sm:$0xff]  ;;  %v292_v54 = vld [vmem:[#allocation4 + $0x128] sm:$0xff] }
  0x74   : > { %996 = vmatprep.subr.bf16.mxu0 %v995_v20  ;;  %v294_v55 = vld [vmem:[#allocation4 + $0x138] sm:$0xff]  ;;  %v1017_v56 = vpack.c.bf16 %v289_v53, %v287_v52  ;;  %v291_v58 = vld [vmem:[#allocation4 + $0x120] sm:$0xff]  ;;  %v293_v59 = vld [vmem:[#allocation4 + $0x130] sm:$0xff] }
  0x75   : > { %v1019_v57 = vpack.c.bf16 %v294_v55, %v292_v54  ;;  %v296_v60 = vld [vmem:[#allocation4 + $0x148] sm:$0xff]  ;;  %v298_v61 = vld [vmem:[#allocation4 + $0x158] sm:$0xff]  ;;  %v1021_v62 = vpack.c.bf16 %v293_v59, %v291_v58  ;;  %v295_v0 = vld [vmem:[#allocation4 + $0x140] sm:$0xff] }
  0x76   : > { %v1023_v63 = vpack.c.bf16 %v298_v61, %v296_v60  ;;  %v297_v1 = vld [vmem:[#allocation4 + $0x150] sm:$0xff]  ;;  %v300_v2 = vld [vmem:[#allocation4 + $0x168] sm:$0xff]  ;;  %v302_v3 = vld [vmem:[#allocation4 + $0x178] sm:$0xff] }
  0x77   : > { %998 = vmatpush1.bf16.msra.mxu0 %v997_v25  ;;  %v1025_v4 = vpack.c.bf16 %v297_v1, %v295_v0  ;;  %v1027_v5 = vpack.c.bf16 %v302_v3, %v300_v2  ;;  %v299_v6 = vld [vmem:[#allocation4 + $0x160] sm:$0xff]  ;;  %v301_v7 = vld [vmem:[#allocation4 + $0x170] sm:$0xff]  ;;  %v304_v8 = vld [vmem:[#allocation4 + $0x188] sm:$0xff] }
  0x78   : > { %1000 = vmatprep.subr.bf16.mxu0 %v999_v26  ;;  %v306_v9 = vld [vmem:[#allocation4 + $0x198] sm:$0xff]  ;;  %v1029_v10 = vpack.c.bf16 %v301_v7, %v299_v6  ;;  %v303_v12 = vld [vmem:[#allocation4 + $0x180] sm:$0xff]  ;;  %v305_v13 = vld [vmem:[#allocation4 + $0x190] sm:$0xff] }
  0x79   : > { %v1031_v11 = vpack.c.bf16 %v306_v9, %v304_v8  ;;  %v308_v14 = vld [vmem:[#allocation4 + $0x1a8] sm:$0xff]  ;;  %v310_v15 = vld [vmem:[#allocation4 + $0x1b8] sm:$0xff]  ;;  %v1033_v16 = vpack.c.bf16 %v305_v13, %v303_v12  ;;  %v307_v18 = vld [vmem:[#allocation4 + $0x1a0] sm:$0xff] }
  0x7a   : > { %v1035_v17 = vpack.c.bf16 %v310_v15, %v308_v14  ;;  %v309_v19 = vld [vmem:[#allocation4 + $0x1b0] sm:$0xff]  ;;  %v312_v20 = vld [vmem:[#allocation4 + $0x1c8] sm:$0xff]  ;;  %v314_v21 = vld [vmem:[#allocation4 + $0x1d8] sm:$0xff] }
  0x7b   : > { %1002 = vmatpush1.bf16.msra.mxu0 %v1001_v31  ;;  %v1037_v22 = vpack.c.bf16 %v309_v19, %v307_v18  ;;  %v1039_v23 = vpack.c.bf16 %v314_v21, %v312_v20  ;;  %v311_v24 = vld [vmem:[#allocation4 + $0x1c0] sm:$0xff]  ;;  %v313_v25 = vld [vmem:[#allocation4 + $0x1d0] sm:$0xff]  ;;  %v316_v26 = vld [vmem:[#allocation4 + $0x1e8] sm:$0xff] }
  0x7c   : > { %1004 = vmatprep.subr.bf16.mxu0 %v1003_v32  ;;  %v318_v27 = vld [vmem:[#allocation4 + $0x1f8] sm:$0xff]  ;;  %v1041_v28 = vpack.c.bf16 %v313_v25, %v311_v24  ;;  %v315_v30 = vld [vmem:[#allocation4 + $0x1e0] sm:$0xff]  ;;  %v317_v31 = vld [vmem:[#allocation4 + $0x1f0] sm:$0xff] }
  0x7d   : > { %v1043_v29 = vpack.c.bf16 %v318_v27, %v316_v26  ;;  %v1045_v32 = vpack.c.bf16 %v317_v31, %v315_v30  ;;  %v223_v33 = vld [vmem:[%s1518_s28] sm:$0xff]  ;;  %v226_v34 = vld [vmem:[%s1518_s28 + $0x18] sm:$0xff]  ;;  %v225_v35 = vld [vmem:[%s1518_s28 + $0x10] sm:$0xff] }
  0x7e   : > { %v228_v36 = vld [vmem:[%s1518_s28 + $0x28] sm:$0xff]  ;;  %v229_v39 = vld [vmem:[%s1518_s28 + $0x30] sm:$0xff]  ;;  %v231_v41 = vld [vmem:[%s1518_s28 + $0x40] sm:$0xff] }
  0x7f   : > { %1006 = vmatpush1.bf16.msra.mxu0 %v1005_v37  ;;  %v227_v37 = vld [vmem:[%s1518_s28 + $0x20] sm:$0xff]  ;;  %v232_v40 = vld [vmem:[%s1518_s28 + $0x48] sm:$0xff]  ;;  %v234_v42 = vld [vmem:[%s1518_s28 + $0x58] sm:$0xff] }
  0x80   : > { %1008 = vmatprep.subr.bf16.mxu0 %v1007_v38  ;;  %v230_v38 = vld [vmem:[%s1518_s28 + $0x38] sm:$0xff]  ;;  %v233_v43 = vld [vmem:[%s1518_s28 + $0x50] sm:$0xff]  ;;  %v240_v48 = vld [vmem:[%s1518_s28 + $0x88] sm:$0xff] }
  0x81   : > { %v238_v46 = vld [vmem:[%s1518_s28 + $0x78] sm:$0xff]  ;;  %v237_v47 = vld [vmem:[%s1518_s28 + $0x70] sm:$0xff]  ;;  %v239_v49 = vld [vmem:[%s1518_s28 + $0x80] sm:$0xff] }
  0x82   : > { %v244_v52 = vld [vmem:[%s1518_s28 + $0xa8] sm:$0xff]  ;;  %v243_v53 = vld [vmem:[%s1518_s28 + $0xa0] sm:$0xff]  ;;  %v246_v54 = vld [vmem:[%s1518_s28 + $0xb8] sm:$0xff] }
  0x83   : > { %1010 = vmatpush1.bf16.msra.mxu0 %v1009_v44  ;;  %v236_v44 = vld [vmem:[%s1518_s28 + $0x68] sm:$0xff]  ;;  %v245_v55 = vld [vmem:[%s1518_s28 + $0xb0] sm:$0xff]  ;;  %v250_v58 = vld [vmem:[%s1518_s28 + $0xd8] sm:$0xff] }
  0x84   : > { %1012 = vmatprep.subr.bf16.mxu0 %v1011_v45  ;;  %v235_v45 = vld [vmem:[%s1518_s28 + $0x60] sm:$0xff]  ;;  %v249_v59 = vld [vmem:[%s1518_s28 + $0xd0] sm:$0xff]  ;;  %v252_v60 = vld [vmem:[%s1518_s28 + $0xe8] sm:$0xff] }
  0x85   : > { %v251_v61 = vld [vmem:[%s1518_s28 + $0xe0] sm:$0xff]  ;;  %v612_v1 = vld [vmem:[#allocation6 + $0x8] sm:$0xff]  ;;  %v613_v3 = vld [vmem:[#allocation6 + $0x10] sm:$0xff] }
  0x86   : > { %v611_v0 = vld [vmem:[#allocation6] sm:$0xff]  ;;  %v616_v7 = vld [vmem:[#allocation6 + $0x28] sm:$0xff]  ;;  %v617_v9 = vld [vmem:[#allocation6 + $0x30] sm:$0xff] }
  0x87   : > { %1014 = vmatpush1.bf16.msra.mxu0 %v1013_v50  ;;  %v242_v50 = vld [vmem:[%s1518_s28 + $0x98] sm:$0xff]  ;;  %v1047_v2 = vpack.c.bf16 %v612_v1, %v611_v0  ;;  %v615_v6 = vld [vmem:[#allocation6 + $0x20] sm:$0xff]  ;;  %v620_v13 = vld [vmem:[#allocation6 + $0x48] sm:$0xff] }
  0x88   : > { %1016 = vmatprep.subr.bf16.mxu0 %v1015_v51  ;;  %v241_v51 = vld [vmem:[%s1518_s28 + $0x90] sm:$0xff]  ;;  %v1055_v8 = vpack.c.bf16 %v616_v7, %v615_v6  ;;  %v619_v12 = vld [vmem:[#allocation6 + $0x40] sm:$0xff]  ;;  %v624_v19 = vld [vmem:[#allocation6 + $0x68] sm:$0xff] }
  0x89   : > { %1048 = vmatprep.subr.bf16.mxu1 %v1047_v2  ;;  %v1063_v14 = vpack.c.bf16 %v620_v13, %v619_v12  ;;  %v621_v15 = vld [vmem:[#allocation6 + $0x50] sm:$0xff]  ;;  %v623_v18 = vld [vmem:[#allocation6 + $0x60] sm:$0xff] }
  0x8a   : > { %1050 = vmatpush3.bf16.msra.mxu1 %v1047_v2  ;;  %v1071_v20 = vpack.c.bf16 %v624_v19, %v623_v18  ;;  %v625_v21 = vld [vmem:[#allocation6 + $0x70] sm:$0xff] }
  0x8b   : > { %1018 = vmatpush1.bf16.msra.mxu0 %v1017_v56  ;;  %v248_v56 = vld [vmem:[%s1518_s28 + $0xc8] sm:$0xff] }
  0x8c   : > { %1020 = vmatprep.subr.bf16.mxu0 %v1019_v57  ;;  %v247_v57 = vld [vmem:[%s1518_s28 + $0xc0] sm:$0xff] }
  0x8f   : > { %1022 = vmatpush1.bf16.msra.mxu0 %v1021_v62  ;;  %v254_v62 = vld [vmem:[%s1518_s28 + $0xf8] sm:$0xff] }
  0x90   : > { %1024 = vmatprep.subr.bf16.mxu0 %v1023_v63  ;;  %v253_v63 = vld [vmem:[%s1518_s28 + $0xf0] sm:$0xff] }
  0x93   : > { %1026 = vmatpush1.bf16.msra.mxu0 %v1025_v4  ;;  %v614_v4 = vld [vmem:[#allocation6 + $0x18] sm:$0xff] }
  0x94   : > { %1028 = vmatprep.subr.bf16.mxu0 %v1027_v5  ;;  %v1051_v5 = vpack.c.bf16 %v614_v4, %v613_v3 }
  0x96   : > { %1052 = vmatprep.subr.bf16.mxu1 %v1051_v5 }
  0x97   : > { %1030 = vmatpush1.bf16.msra.mxu0 %v1029_v10  ;;  %1054 = vmatpush3.bf16.msra.mxu1 %v1051_v5  ;;  %v618_v10 = vld [vmem:[#allocation6 + $0x38] sm:$0xff] }
  0x98   : > { %1032 = vmatprep.subr.bf16.mxu0 %v1031_v11  ;;  %1056 = vmatprep.subr.bf16.mxu1 %v1055_v8  ;;  %v1059_v11 = vpack.c.bf16 %v618_v10, %v617_v9 }
  0x9b   : > { %1034 = vmatpush1.bf16.msra.mxu0 %v1033_v16  ;;  %1058 = vmatpush3.bf16.msra.mxu1 %v1055_v8  ;;  %v622_v16 = vld [vmem:[#allocation6 + $0x58] sm:$0xff] }
  0x9c   : > { %1036 = vmatprep.subr.bf16.mxu0 %v1035_v17  ;;  %1060 = vmatprep.subr.bf16.mxu1 %v1059_v11  ;;  %v1067_v17 = vpack.c.bf16 %v622_v16, %v621_v15 }
  0x9f   : > { %1038 = vmatpush1.bf16.msra.mxu0 %v1037_v22  ;;  %1062 = vmatpush3.bf16.msra.mxu1 %v1059_v11  ;;  %v626_v22 = vld [vmem:[#allocation6 + $0x78] sm:$0xff] }
  0xa0   : > { %1040 = vmatprep.subr.bf16.mxu0 %v1039_v23  ;;  %1064 = vmatprep.subr.bf16.mxu1 %v1063_v14  ;;  %v1075_v23 = vpack.c.bf16 %v626_v22, %v625_v21 }
  0xa3   : > { %1042 = vmatpush1.bf16.msra.mxu0 %v1041_v28  ;;  %1066 = vmatpush3.bf16.msra.mxu1 %v1063_v14 }
  0xa4   : > { %1044 = vmatprep.subr.bf16.mxu0 %v1043_v29  ;;  %1068 = vmatprep.subr.bf16.mxu1 %v1067_v17 }
  0xa7   : > { %1046 = vmatpush1.bf16.msra.mxu0 %v1045_v32  ;;  %1070 = vmatpush3.bf16.msra.mxu1 %v1067_v17 }
  0xa8   : > { %1072 = vmatprep.subr.bf16.mxu1 %v1071_v20 }
  0xaa   : > { %384 = vmatmul.mubr.f32.vlgmr.msra.gmra.mrb[0].mxu0 %v223_v33 }
  0xab   : > { %389 = vmatprep.mubr.f32.mxu0 %v226_v34  ;;  %1074 = vmatpush3.bf16.msra.mxu1 %v1071_v20 }
  0xac   : > { %1076 = vmatprep.subr.bf16.mxu1 %v1075_v23 }
  0xae   : > { %390 = vmatmul.mubr.f32.gmra.mrb[2].mxu0 %v225_v35 }
  0xaf   : > { %395 = vmatprep.mubr.f32.mxu0 %v228_v36  ;;  %1078 = vmatpush3.bf16.msra.mxu1 %v1075_v23 }
  0xb2   : > { %396 = vmatmul.mubr.f32.gmra.mrb[4].mxu0 %v227_v37 }
  0xb3   : > { %401 = vmatprep.mubr.f32.mxu0 %v230_v38 }
  0xb6   : > { %402 = vmatmul.mubr.f32.gmra.mrb[6].mxu0 %v229_v39 }
  0xb7   : > { %407 = vmatprep.mubr.f32.mxu0 %v232_v40 }
  0xba   : > { %408 = vmatmul.mubr.f32.gmra.mrb[8].mxu0 %v231_v41 }
  0xbb   : > { %413 = vmatprep.mubr.f32.mxu0 %v234_v42 }
  0xbe   : > { %414 = vmatmul.mubr.f32.gmra.mrb[10].mxu0 %v233_v43 }
  0xbf   : > { %419 = vmatprep.mubr.f32.mxu0 %v236_v44 }
  0xc2   : > { %420 = vmatmul.mubr.f32.gmra.mrb[12].mxu0 %v235_v45 }
  0xc3   : > { %425 = vmatprep.mubr.f32.mxu0 %v238_v46 }
  0xc6   : > { %426 = vmatmul.mubr.f32.gmra.mrb[14].mxu0 %v237_v47 }
  0xc7   : > { %431 = vmatprep.mubr.f32.mxu0 %v240_v48 }
  0xca   : > { %432 = vmatmul.mubr.f32.gmra.mrb[16].mxu0 %v239_v49 }
  0xcb   : > { %437 = vmatprep.mubr.f32.mxu0 %v242_v50 }
  0xce   : > { %438 = vmatmul.mubr.f32.gmra.mrb[18].mxu0 %v241_v51  ;;  %v576_v51 = vlaneseq }
  0xcf   : > { %443 = vmatprep.mubr.f32.mxu0 %v244_v52 }
  0xd2   : > { %444 = vmatmul.mubr.f32.gmra.mrb[20].mxu0 %v243_v53 }
  0xd3   : > { %449 = vmatprep.mubr.f32.mxu0 %v246_v54 }
  0xd6   : > { %450 = vmatmul.mubr.f32.gmra.mrb[22].mxu0 %v245_v55 }
  0xd7   : > { %455 = vmatprep.mubr.f32.mxu0 %v248_v56 }
  0xda   : > { %456 = vmatmul.mubr.f32.gmra.mrb[24].mxu0 %v247_v57 }
  0xdb   : > { %461 = vmatprep.mubr.f32.mxu0 %v250_v58  ;;  %v1585_v58 = vand.u32 127, %v576_v51 }
  0xdd   : > { %vm578_vm0 = vcmp.lt.s32.totalorder %v1585_v58, 16 }
  0xde   : > { %462 = vmatmul.mubr.f32.gmra.mrb[26].mxu0 %v249_v59 }
  0xdf   : > { %467 = vmatprep.mubr.f32.mxu0 %v252_v60 }
  0xe2   : > { %468 = vmatmul.mubr.f32.gmra.mrb[28].mxu0 %v251_v61 }
  0xe3   : > { %473 = vmatprep.mubr.f32.mxu0 %v254_v62 }
  0xe6   : > { %474 = vmatmul.mubr.f32.gmra.mrb[30].mxu0 %v253_v63 }
 0x17d   : > { %v385_v24 = vpop.f32.mrb[0].mxu0 }
 0x17e   : > { %v480_v25 = vsub.f32 0.0, %v385_v24  ;;  %v387_v26 = vpop.f32.mrb[1].mxu0 }
 0x180   : > { %v496_v27 = vmul.f32 1.442695, %v480_v25 }
 0x181   : > { %v391_v28 = vpop.f32.mrb[2].mxu0 }
 0x182   : > { %1143 = vpow2.f32 %v496_v27  ;;  %v481_v29 = vsub.f32 0.0, %v391_v28  ;;  %v393_v30 = vpop.f32.mrb[3].mxu0 }
 0x184   : > { %v498_v31 = vmul.f32 1.442695, %v481_v29 }
 0x185   : > { %v1560_v32 = vpop.f32.mrb[4].mxu0 }
 0x186   : > { %1145 = vpow2.f32 %v498_v31  ;;  %v482_v33 = vsub.f32 0.0, %v1560_v32  ;;  %v1563_v34 = vpop.f32.mrb[5].mxu0 }
 0x188   : > { %v500_v35 = vmul.f32 1.442695, %v482_v33 }
 0x189   : > { %v1565_v36 = vpop.f32.mrb[6].mxu0 }
 0x18a   : > { %1147 = vpow2.f32 %v500_v35  ;;  %v483_v37 = vsub.f32 0.0, %v1565_v36  ;;  %v1568_v38 = vpop.f32.mrb[7].mxu0 }
 0x18c   : > { %v1144_v39 = vpop.eup %1143  ;;  %v502_v40 = vmul.f32 1.442695, %v483_v37 }
 0x18d   : > { %v528_v41 = vadd.f32 1.0, %v1144_v39  ;;  %v1570_v42 = vpop.f32.mrb[8].mxu0 }
 0x18e   : > { %1149 = vpow2.f32 %v502_v40  ;;  %v484_v43 = vsub.f32 0.0, %v1570_v42  ;;  %v1573_v44 = vpop.f32.mrb[9].mxu0 }
 0x18f   : > { %1151 = vrcp.f32 %v528_v41 }
 0x190   : > { %v1146_v45 = vpop.eup %1145  ;;  %v504_v46 = vmul.f32 1.442695, %v484_v43 }
 0x191   : > { %v529_v47 = vadd.f32 1.0, %v1146_v45  ;;  %v1575_v48 = vpop.f32.mrb[10].mxu0 }
 0x192   : > { %1153 = vpow2.f32 %v504_v46  ;;  %v485_v49 = vsub.f32 0.0, %v1575_v48  ;;  %v1578_v50 = vpop.f32.mrb[11].mxu0 }
 0x193   : > { %1155 = vrcp.f32 %v529_v47 }
 0x194   : > { %v1148_v52 = vpop.eup %1147  ;;  %v506_v53 = vmul.f32 1.442695, %v485_v49 }
 0x195   : > { %v530_v54 = vadd.f32 1.0, %v1148_v52  ;;  %v1580_v55 = vpop.f32.mrb[12].mxu0 }
 0x196   : > { %1157 = vpow2.f32 %v506_v53  ;;  %v486_v56 = vsub.f32 0.0, %v1580_v55  ;;  %v1583_v57 = vpop.f32.mrb[13].mxu0 }
 0x197   : > { %1159 = vrcp.f32 %v530_v54 }
 0x198   : > { %v1150_v59 = vpop.eup %1149  ;;  %v508_v60 = vmul.f32 1.442695, %v486_v56 }
 0x199   : > { %v1152_v61 = vpop.eup %1151  ;;  %v531_v62 = vadd.f32 1.0, %v1150_v59  ;;  %v1587_v63 = vpop.f32.mrb[14].mxu0 }
 0x19a   : > { %v560_v0 = vmul.f32 %v1152_v61, %v385_v24  ;;  %1161 = vpow2.f32 %v508_v60  ;;  %v487_v1 = vsub.f32 0.0, %v1587_v63  ;;  %v1590_v2 = vpop.f32.mrb[15].mxu0 }
 0x19b   : > { %1163 = vrcp.f32 %v531_v62 }
 0x19c   : > { %v1154_v3 = vpop.eup %1153  ;;  %v579_v4 = vmul.f32 %v560_v0, %v387_v26  ;;  %v510_v5 = vmul.f32 1.442695, %v487_v1 }
 0x19d   : > { %v1156_v6 = vpop.eup %1155  ;;  %v532_v7 = vadd.f32 1.0, %v1154_v3  ;;  %v1593_v8 = vpop.f32.mrb[16].mxu0 }
 0x19e   : > { %v561_v9 = vmul.f32 %v1156_v6, %v391_v28  ;;  %1165 = vpow2.f32 %v510_v5  ;;  %v488_v10 = vsub.f32 0.0, %v1593_v8  ;;  %v1596_v11 = vpop.f32.mrb[17].mxu0  ;;  %v595_v12 = vsel %vm578_vm0, %v560_v0, %v579_v4 }
 0x19f   : > { %1167 = vrcp.f32 %v532_v7  ;;  %959 = vmatprep.mubr.f32.mxu1 %v595_v12 }
 0x1a0   : > { %v1158_v13 = vpop.eup %1157  ;;  %v580_v14 = vmul.f32 %v561_v9, %v393_v30  ;;  %v512_v15 = vmul.f32 1.442695, %v488_v10 }
 0x1a1   : > { %v1160_v16 = vpop.eup %1159  ;;  %v533_v17 = vadd.f32 1.0, %v1158_v13  ;;  %v1600_v18 = vpop.f32.mrb[18].mxu0 }
 0x1a2   : > { %v562_v19 = vmul.f32 %v1160_v16, %v1560_v32  ;;  %1169 = vpow2.f32 %v512_v15  ;;  %v489_v20 = vsub.f32 0.0, %v1600_v18  ;;  %v1604_v21 = vpop.f32.mrb[19].mxu0  ;;  %v596_v22 = vsel %vm578_vm0, %v561_v9, %v580_v14 }
 0x1a3   : > { %1171 = vrcp.f32 %v533_v17  ;;  %960 = vmatmul.mubr.f32.vlgmr.msra.gmra.mrb[0].mxu1 %v596_v22 }
 0x1a4   : > { %v1162_v23 = vpop.eup %1161  ;;  %v581_v24 = vmul.f32 %v562_v19, %v1563_v34  ;;  %v514_v25 = vmul.f32 1.442695, %v489_v20 }
 0x1a5   : > { %v1164_v26 = vpop.eup %1163  ;;  %v534_v27 = vadd.f32 1.0, %v1162_v23  ;;  %v1609_v28 = vpop.f32.mrb[20].mxu0 }
 0x1a6   : > { %v563_v29 = vmul.f32 %v1164_v26, %v1565_v36  ;;  %1173 = vpow2.f32 %v514_v25  ;;  %v490_v30 = vsub.f32 0.0, %v1609_v28  ;;  %v1613_v31 = vpop.f32.mrb[21].mxu0  ;;  %v597_v32 = vsel %vm578_vm0, %v562_v19, %v581_v24 }
 0x1a7   : > { %1175 = vrcp.f32 %v534_v27  ;;  %962 = vmatprep.mubr.f32.mxu1 %v597_v32 }
 0x1a8   : > { %v1166_v33 = vpop.eup %1165  ;;  %v582_v34 = vmul.f32 %v563_v29, %v1568_v38  ;;  %v516_v35 = vmul.f32 1.442695, %v490_v30 }
 0x1a9   : > { %v1168_v37 = vpop.eup %1167  ;;  %v535_v39 = vadd.f32 1.0, %v1166_v33  ;;  %v1618_v40 = vpop.f32.mrb[22].mxu0 }
 0x1aa   : > { %v564_v36 = vmul.f32 %v1168_v37, %v1570_v42  ;;  %1177 = vpow2.f32 %v516_v35  ;;  %v491_v41 = vsub.f32 0.0, %v1618_v40  ;;  %v1622_v43 = vpop.f32.mrb[23].mxu0  ;;  %v598_v45 = vsel %vm578_vm0, %v563_v29, %v582_v34 }
 0x1ab   : > { %1179 = vrcp.f32 %v535_v39  ;;  %963 = vmatmul.mubr.f32.gmra.mrb[2].mxu1 %v598_v45 }
 0x1ac   : > { %v1170_v46 = vpop.eup %1169  ;;  %v583_v38 = vmul.f32 %v564_v36, %v1573_v44  ;;  %v518_v47 = vmul.f32 1.442695, %v491_v41 }
 0x1ad   : > { %v1172_v49 = vpop.eup %1171  ;;  %v536_v51 = vadd.f32 1.0, %v1170_v46  ;;  %v1627_v52 = vpop.f32.mrb[24].mxu0 }
 0x1ae   : > { %v565_v42 = vmul.f32 %v1172_v49, %v1575_v48  ;;  %1181 = vpow2.f32 %v518_v47  ;;  %v492_v53 = vsub.f32 0.0, %v1627_v52  ;;  %v1631_v54 = vpop.f32.mrb[25].mxu0  ;;  %v599_v56 = vsel %vm578_vm0, %v564_v36, %v583_v38 }
 0x1af   : > { %1183 = vrcp.f32 %v536_v51  ;;  %965 = vmatprep.mubr.f32.mxu1 %v599_v56 }
 0x1b0   : > { %v1174_v59 = vpop.eup %1173  ;;  %v584_v44 = vmul.f32 %v565_v42, %v1578_v50  ;;  %v520_v60 = vmul.f32 1.442695, %v492_v53 }
 0x1b1   : > { %v1176_v61 = vpop.eup %1175  ;;  %v537_v62 = vadd.f32 1.0, %v1174_v59  ;;  %v1636_v0 = vpop.f32.mrb[26].mxu0 }
 0x1b2   : > { %v566_v48 = vmul.f32 %v1176_v61, %v1580_v55  ;;  %1185 = vpow2.f32 %v520_v60  ;;  %v493_v1 = vsub.f32 0.0, %v1636_v0  ;;  %v1640_v3 = vpop.f32.mrb[27].mxu0  ;;  %v600_v4 = vsel %vm578_vm0, %v565_v42, %v584_v44 }
 0x1b3   : > { %1187 = vrcp.f32 %v537_v62  ;;  %966 = vmatmul.mubr.f32.gmra.mrb[4].mxu1 %v600_v4 }
 0x1b4   : > { %v1178_v5 = vpop.eup %1177  ;;  %v585_v50 = vmul.f32 %v566_v48, %v1583_v57  ;;  %v522_v6 = vmul.f32 1.442695, %v493_v1 }
 0x1b5   : > { %v1180_v7 = vpop.eup %1179  ;;  %v538_v9 = vadd.f32 1.0, %v1178_v5  ;;  %v469_v10 = vpop.f32.mrb[28].mxu0 }
 0x1b6   : > { %v567_v12 = vmul.f32 %v1180_v7, %v1587_v63  ;;  %1189 = vpow2.f32 %v522_v6  ;;  %v494_v55 = vsub.f32 0.0, %v469_v10  ;;  %v471_v13 = vpop.f32.mrb[29].mxu0  ;;  %v601_v14 = vsel %vm578_vm0, %v566_v48, %v585_v50 }
 0x1b7   : > { %1191 = vrcp.f32 %v538_v9  ;;  %968 = vmatprep.mubr.f32.mxu1 %v601_v14 }
 0x1b8   : > { %v1182_v15 = vpop.eup %1181  ;;  %v586_v16 = vmul.f32 %v567_v12, %v1590_v2  ;;  %v524_v17 = vmul.f32 1.442695, %v494_v55 }
 0x1b9   : > { %v1184_v19 = vpop.eup %1183  ;;  %v539_v57 = vadd.f32 1.0, %v1182_v15  ;;  %v475_v20 = vpop.f32.mrb[30].mxu0 }
 0x1ba   : > { %v568_v22 = vmul.f32 %v1184_v19, %v1593_v8  ;;  %1193 = vpow2.f32 %v524_v17  ;;  %v495_v23 = vsub.f32 0.0, %v475_v20  ;;  %v477_v63 = vpop.f32.mrb[31].mxu0  ;;  %v602_v24 = vsel %vm578_vm0, %v567_v12, %v586_v16 }
 0x1bb   : > { %1195 = vrcp.f32 %v539_v57  ;;  %969 = vmatmul.mubr.f32.gmra.mrb[6].mxu1 %v602_v24 }
 0x1bc   : > { %v1186_v25 = vpop.eup %1185  ;;  %v587_v26 = vmul.f32 %v568_v22, %v1596_v11  ;;  %v526_v27 = vmul.f32 1.442695, %v495_v23 }
 0x1bd   : > { %v1188_v29 = vpop.eup %1187  ;;  %v540_v2 = vadd.f32 1.0, %v1186_v25 }
 0x1be   : > { %v569_v30 = vmul.f32 %v1188_v29, %v1600_v18  ;;  %1197 = vpow2.f32 %v526_v27  ;;  %v603_v8 = vsel %vm578_vm0, %v568_v22, %v587_v26 }
 0x1bf   : > { %1199 = vrcp.f32 %v540_v2  ;;  %971 = vmatprep.mubr.f32.mxu1 %v603_v8 }
 0x1c0   : > { %v1190_v32 = vpop.eup %1189  ;;  %v588_v33 = vmul.f32 %v569_v30, %v1604_v21 }
 0x1c1   : > { %v1192_v34 = vpop.eup %1191  ;;  %v541_v35 = vadd.f32 1.0, %v1190_v32 }
 0x1c2   : > { %v570_v37 = vmul.f32 %v1192_v34, %v1609_v28  ;;  %v604_v11 = vsel %vm578_vm0, %v569_v30, %v588_v33 }
 0x1c3   : > { %1201 = vrcp.f32 %v541_v35  ;;  %972 = vmatmul.mubr.f32.gmra.mrb[8].mxu1 %v604_v11 }
 0x1c4   : > { %v1194_v39 = vpop.eup %1193  ;;  %v589_v18 = vmul.f32 %v570_v37, %v1613_v31 }
 0x1c5   : > { %v1196_v36 = vpop.eup %1195  ;;  %v542_v41 = vadd.f32 1.0, %v1194_v39 }
 0x1c6   : > { %v571_v45 = vmul.f32 %v1196_v36, %v1618_v40  ;;  %v605_v46 = vsel %vm578_vm0, %v570_v37, %v589_v18 }
 0x1c7   : > { %1203 = vrcp.f32 %v542_v41  ;;  %974 = vmatprep.mubr.f32.mxu1 %v605_v46 }
 0x1c8   : > { %v1198_v21 = vpop.eup %1197  ;;  %v590_v28 = vmul.f32 %v571_v45, %v1622_v43 }
 0x1c9   : > { %v1200_v38 = vpop.eup %1199  ;;  %v543_v47 = vadd.f32 1.0, %v1198_v21 }
 0x1ca   : > { %v572_v49 = vmul.f32 %v1200_v38, %v1627_v52  ;;  %v606_v51 = vsel %vm578_vm0, %v571_v45, %v590_v28 }
 0x1cb   : > { %1205 = vrcp.f32 %v543_v47  ;;  %975 = vmatmul.mubr.f32.gmra.mrb[10].mxu1 %v606_v51 }
 0x1cc   : > { %v591_v31 = vmul.f32 %v572_v49, %v1631_v54 }
 0x1cd   : > { %v1202_v40 = vpop.eup %1201 }
 0x1ce   : > { %v573_v42 = vmul.f32 %v1202_v40, %v1636_v0  ;;  %v607_v53 = vsel %vm578_vm0, %v572_v49, %v591_v31 }
 0x1cf   : > { %977 = vmatprep.mubr.f32.mxu1 %v607_v53 }
 0x1d0   : > { %v592_v43 = vmul.f32 %v573_v42, %v1640_v3 }
 0x1d1   : > { %v1204_v56 = vpop.eup %1203 }
 0x1d2   : > { %v574_v59 = vmul.f32 %v1204_v56, %v469_v10  ;;  %v608_v52 = vsel %vm578_vm0, %v573_v42, %v592_v43 }
 0x1d3   : > { %978 = vmatmul.mubr.f32.gmra.mrb[12].mxu1 %v608_v52 }
 0x1d4   : > { %v593_v44 = vmul.f32 %v574_v59, %v471_v13 }
 0x1d5   : > { %v1206_v60 = vpop.eup %1205 }
 0x1d6   : > { %v575_v61 = vmul.f32 %v1206_v60, %v475_v20  ;;  %v609_v54 = vsel %vm578_vm0, %v574_v59, %v593_v44 }
 0x1d7   : > { %980 = vmatprep.mubr.f32.mxu1 %v609_v54 }
 0x1d8   : > { %v594_v62 = vmul.f32 %v575_v61, %v477_v63 }
 0x1da   : > { %v610_v0 = vsel %vm578_vm0, %v575_v61, %v594_v62 }
 0x1db   : > { %981 = vmatmul.mubr.f32.gmra.mrb[14].mxu1 %v610_v0 }
 0x276   : > { %v961_v58 = vpop.f32.mrb[0].mxu1 }
 0x277   : > { %774 = vst.msk [vmem:[%s1684_s7 + $0x8] sm:$0xff] %vm772_vm1, %v961_v58  ;;  %v693_v48 = vpop.f32.mrb[1].mxu1 }
 0x278   : > { %773 = vst.msk [vmem:[%s1684_s7] sm:$0xff] %vm772_vm1, %v693_v48 }
 0x27e   : > { %v964_v1 = vpop.f32.mrb[2].mxu1 }
 0x27f   : > { %776 = vst.msk [vmem:[%s1684_s7 + $0x18] sm:$0xff] %vm772_vm1, %v964_v1  ;;  %v703_v3 = vpop.f32.mrb[3].mxu1 }
 0x280   : > { %775 = vst.msk [vmem:[%s1684_s7 + $0x10] sm:$0xff] %vm772_vm1, %v703_v3 }
 0x286   : > { %v967_v4 = vpop.f32.mrb[4].mxu1 }
 0x287   : > { %778 = vst.msk [vmem:[%s1684_s7 + $0x28] sm:$0xff] %vm772_vm1, %v967_v4  ;;  %v713_v5 = vpop.f32.mrb[5].mxu1 }
 0x288   : > { %777 = vst.msk [vmem:[%s1684_s7 + $0x20] sm:$0xff] %vm772_vm1, %v713_v5 }
 0x28e   : > { %v970_v50 = vpop.f32.mrb[6].mxu1 }
 0x28f   : > { %780 = vst.msk [vmem:[%s1684_s7 + $0x38] sm:$0xff] %vm772_vm1, %v970_v50  ;;  %v723_v6 = vpop.f32.mrb[7].mxu1 }
 0x290   : > { %779 = vst.msk [vmem:[%s1684_s7 + $0x30] sm:$0xff] %vm772_vm1, %v723_v6 }
 0x296   : > { %v973_v7 = vpop.f32.mrb[8].mxu1 }
 0x297   : > { %782 = vst.msk [vmem:[%s1684_s7 + $0x48] sm:$0xff] %vm772_vm1, %v973_v7  ;;  %v733_v9 = vpop.f32.mrb[9].mxu1 }
 0x298   : > { %781 = vst.msk [vmem:[%s1684_s7 + $0x40] sm:$0xff] %vm772_vm1, %v733_v9 }
 0x29e   : > { %v976_v10 = vpop.f32.mrb[10].mxu1 }
 0x29f   : > { %784 = vst.msk [vmem:[%s1684_s7 + $0x58] sm:$0xff] %vm772_vm1, %v976_v10  ;;  %v743_v12 = vpop.f32.mrb[11].mxu1 }
 0x2a0   : > { %783 = vst.msk [vmem:[%s1684_s7 + $0x50] sm:$0xff] %vm772_vm1, %v743_v12 }
 0x2a6   : > { %v979_v55 = vpop.f32.mrb[12].mxu1 }
 0x2a7   : > { %786 = vst.msk [vmem:[%s1684_s7 + $0x68] sm:$0xff] %vm772_vm1, %v979_v55  ;;  %v753_v13 = vpop.f32.mrb[13].mxu1 }
 0x2a8   : > { %785 = vst.msk [vmem:[%s1684_s7 + $0x60] sm:$0xff] %vm772_vm1, %v753_v13 }
 0x2ae   : > { %v982_v14 = vpop.f32.mrb[14].mxu1 }
 0x2af   : > { %788 = vst.msk [vmem:[%s1684_s7 + $0x78] sm:$0xff] %vm772_vm1, %v982_v14  ;;  %v763_v15 = vpop.f32.mrb[15].mxu1 }
 0x2b0   : > { %787 = vst.msk [vmem:[%s1684_s7 + $0x70] sm:$0xff] %vm772_vm1, %v763_v15 }
 0x2b1 PF: > { %p14_p6 = scmp.ge.s32.totalorder %s1459_s4, 4   ;;  %s1747_s12 = smov %s1323_s13 }
 0x2b2   : > { %s1748_s13 = smov %s1327_s14  ;;  %s1749_s14 = smov %s1468_s9 }
 0x2b3   : > { %s1750_s15 = smov %s1459_s4  ;;  %16 = sbr.rel (!%p14_p6) target bundleno = 4 (0x4), region = 80 }
 0x2ba   :  { %811 = vsyncpa [#allocation3], 1 }
 0x2bb   :  { %813 = vsyncpa [#allocation3 + $0x1], 1 }
 0x2bc   :  { %814 = vsyncpa [#allocation5], 1 }

</bundles_post_ra>
